<compile_context>
chip_gen: v6e
topology: v6e:2x2x1
jax: 0.10.0
libtpu: 0.0.40
codegen_flags: <defaults>
</compile_context>

<pallas_src>
import numpy as np
import jax
import jax.numpy as jnp
from jax.experimental import pallas as pl
from jax.experimental.pallas import tpu as pltpu


_LANES = 128
_GRANULE = 32      # row granule: covers sublane packing of f32(8)/bf16(16)/int8(32)


def _round_up(x: int, m: int) -> int:
    return ((x + m - 1) // m) * m


def _cdiv(a: int, b: int) -> int:
    return -(-a // b)


def _vmem_capacity_bytes() -> int:
    """Per-core VMEM capacity; conservative fallback if the query fails."""
    try:
        return int(pltpu.get_tpu_info().vmem_capacity_bytes)
    except Exception:
        return 64 * 1024 * 1024        # v7x per-TensorCore size (smallest)


def _detect_num_cores() -> int:
    """2 on chips that expose two TensorCores behind one device, else 1."""
    try:
        kind = jax.devices()[0].device_kind.lower()
    except Exception:
        return 1
    if any(tag in kind for tag in ("v4", "v5p", "v7", "7x")):
        return 2
    return 1


def _make_loss_kernel(loss_type, gamma, weights_np, T, n_tiles, tile_rows,
                      needs_guard):
    """Kernel body with loss_type / gamma / class weights baked in statically.

    Refs:
      s_ref   : [TR, 128] int8/int16  signed one-hot label stream
      x_ref   : [TR, 128] native      logits (flat, lane+sublane dense)
      out_ref : [1, 8, 128] f32       unnormalized partial sum (per partial p)
      acc_ref : [8, 128]  f32         VMEM lane-wide running accumulator
    """
    gamma = float(gamma)
    use_focal = (loss_type == "focal") and (gamma != 0.0)
    wlist = [float(w) for w in np.asarray(weights_np, dtype=np.float32)]

    def kernel(s_ref, x_ref, out_ref, acc_ref):
        p = pl.program_id(0)
        t = pl.program_id(1)

        @pl.when(t == 0)
        def _init():
            acc_ref[...] = jnp.zeros_like(acc_ref)

        def compute():
            s = s_ref[...].astype(jnp.int32)       # [TR, 128]
            x = x_ref[...].astype(jnp.float32)     # [TR, 128] (f32 in-kernel)

            mask = s > 0                           # element is the true class
            valid = s != 0                         # 0 marks padding / garbage tail
            lab = jnp.abs(s) - 1                   # label of the owning example

            # Class-balance weight of the owning example.  Weights are static
            # Python floats -> unrolled select chain (C is small for this
            # loss; a gather/MXU path would be preferable for very large C).
            alpha = jnp.zeros_like(x)
            for c, wc in enumerate(wlist):
                alpha = jnp.where(lab == c, jnp.float32(wc), alpha)

            ax = jnp.abs(x)
            e = jnp.exp(-ax)
            sp = jnp.log1p(e)                      # log1p(exp(-|x|)), shared term
            rx = jnp.maximum(x, 0.0)               # relu(x);  relu(-x) == rx - x
            xy = jnp.where(mask, x, 0.0)           # x * one_hot without a multiply
            bce = rx - xy + sp                     # stable BCE-with-logits
            if use_focal:
                # exp(-g*y*x - g*log(1 + exp(-x))), overflow-safe rewrite.
                mod = jnp.exp(-gamma * (xy + (rx - x) + sp))
                weighted = alpha * bce * mod
            else:
                weighted = alpha * bce
            # Padded / ragged elements carry s == 0 -> select 0 (kills any
            # inf/NaN produced from garbage logits in the dead branch).
            weighted = jnp.where(valid, weighted, 0.0)

            # Lane-wide accumulation: pure VALU adds per tile; the single
            # cross-lane/sublane reduction happens once in the wrapper.
            acc_ref[...] += weighted.reshape(tile_rows // 8, 8, _LANES).sum(axis=0)

        if needs_guard:
            # Clamped duplicate tiles (odd tile count split over P partials)
            # are skipped with a scalar guard instead of padding a full block.
            pl.when(p * T + t < n_tiles)(compute)
        else:
            compute()

        @pl.when(t == T - 1)
        def _finalize():
            out_ref[...] = acc_ref[...].reshape(1, 8, _LANES)

    return kernel


class WeightedLoss:
    """Pallas TPU port of the PyTorch WeightedLoss (class-balanced focal/sigmoid)."""

    def __init__(self, loss_type, samples_per_cls, beta, gamma,
                 tile_rows=None, parallel=None, core_parallel=False):
        self.loss_type = loss_type
        self.beta = float(beta)
        self.gamma = float(gamma)
        self.num_cls = len(samples_per_cls)
        self.tile_rows = tile_rows        # optional override (tests / tuning)
        self.parallel = parallel          # optional override of the P split
        self.core_parallel = core_parallel  # explicit 2-TC sharding (v7x)
        effective = 1.0 - np.power(beta, np.asarray(samples_per_cls, dtype=np.float64))
        weights = (1.0 - beta) / effective
        weights = weights / np.sum(weights) * self.num_cls
        self.weights_np = np.asarray(weights, dtype=np.float32)
        self.weights = jnp.asarray(self.weights_np)          # [C]

    def __call__(self, logits, labels):
        B, C = logits.shape
        assert C == self.num_cls
        if self.loss_type not in ("focal", "sigmoid"):
            # TODO(synk): the reference 'softmax' branch calls
            # F.binary_cross_entropy on raw logits (invalid outside [0,1]);
            # not reproduced here.
            raise NotImplementedError(f"loss_type={self.loss_type!r}")
        assert C + 1 < 32768, "label-stream encoding needs C + 1 to fit int16"

        total = B * C
        rows_x = _cdiv(total, _LANES)

        # ---- generation-aware tiling / VMEM budget (review #1, #6) ---------
        vmem_cap = _vmem_capacity_bytes()
        # f32-footprint budget per block keeps in-kernel intermediates bounded
        # on 64 MiB/TC parts (v7x) while 128 MiB parts take bigger blocks.
        blk_budget = (4 if vmem_cap >= 96 * 1024 * 1024 else 2) * 1024 * 1024
        vmem_limit = int(min(max(32 * 1024 * 1024, vmem_cap * 3 // 4),
                             96 * 1024 * 1024))

        P = self.parallel if self.parallel is not None else _detect_num_cores()
        P = max(1, int(P))

        if self.tile_rows is not None:
            TR = _round_up(max(int(self.tile_rows), 1), _GRANULE)
        else:
            budget_rows = max(_GRANULE,
                              (blk_budget // (_LANES * 4)) // _GRANULE * _GRANULE)
            need_rows = _round_up(_cdiv(rows_x, P), _GRANULE)
            TR = min(budget_rows, need_rows)

        n_tiles = _cdiv(rows_x, TR)
        P = min(P, n_tiles)               # never more partials than real tiles
        T = _cdiv(n_tiles, P)
        needs_guard = (P * T != n_tiles)

        # ---- lane+sublane-dense operands, no transpose (review #2, #10) ----
        # Flat row-major view of the logits.  Worst case this is one compact
        # relayout; padding only when B*C % 128 != 0.  (allow_input_fusion
        # could fuse even that into the pallas_call operand - left as a note.)
        x_flat = logits.reshape(-1)
        pad_x = rows_x * _LANES - total
        if pad_x:
            x_flat = jnp.pad(x_flat, (0, pad_x))
        x2 = x_flat.reshape(rows_x, _LANES)

        # Compact signed-one-hot label stream (review #7, #9): (label+1) at
        # the true-class slot, -(label+1) elsewhere, 0 on padding.  One byte
        # per element encodes the one-hot mask, the class index and validity.
        lab_dtype = jnp.int8 if C + 1 <= 127 else jnp.int16
        lab1 = labels.astype(jnp.int32) + 1
        onehot = labels[:, None].astype(jnp.int32) == jnp.arange(C, dtype=jnp.int32)[None, :]
        s = jnp.where(onehot, lab1[:, None], -lab1[:, None]).astype(lab_dtype)
        s_flat = s.reshape(-1)
        rows_s = n_tiles * TR             # never-ragged: padded with zeros
        pad_s = rows_s * _LANES - total
        if pad_s:
            s_flat = jnp.pad(s_flat, (0, pad_s))
        s2 = s_flat.reshape(rows_s, _LANES)

        # ---- pallas_call ----------------------------------------------------
        if needs_guard:
            def idx_map(p, t):
                return (jnp.minimum(p * T + t, n_tiles - 1), 0)
        else:
            def idx_map(p, t):
                return (p * T + t, 0)

        kernel = _make_loss_kernel(self.loss_type, self.gamma, self.weights_np,
                                   T, n_tiles, TR, needs_guard)

        if self.core_parallel and P > 1:
            # Explicit per-TensorCore sharding of the partial axis (v7x).
            dim_sem = (pltpu.CORE_PARALLEL, pltpu.ARBITRARY)
        else:
            dim_sem = ("parallel", "arbitrary")

        partials = pl.pallas_call(
            kernel,
            out_shape=jax.ShapeDtypeStruct((P, 8, _LANES), jnp.float32),
            grid=(P, T),
            in_specs=[
                pl.BlockSpec((TR, _LANES), idx_map),   # signed one-hot labels
                pl.BlockSpec((TR, _LANES), idx_map),   # logits
            ],
            out_specs=pl.BlockSpec((1, 8, _LANES), lambda p, t: (p, 0, 0)),
            scratch_shapes=[pltpu.VMEM((8, _LANES), jnp.float32)],
            compiler_params=pltpu.CompilerParams(
                dimension_semantics=dim_sem,
                vmem_limit_bytes=vmem_limit,
            ),
        )(s2, x2)

        total_sum = jnp.sum(partials)     # single final cross-lane reduction
        if self.loss_type == "focal":
            # Reference divides by sum(one_hot) == B (labels assumed in [0, C)).
            return total_sum / jnp.float32(B)
        return total_sum / jnp.float32(B * C)


def _reference_loss(logits, labels, weights, loss_type, gamma):
    """Pure-JAX reference mirroring the PyTorch forward."""
    x = logits.astype(jnp.float32)
    B, C = x.shape
    y = jax.nn.one_hot(labels, C, dtype=jnp.float32)
    alpha = jnp.sum(weights[None, :] * y, axis=1, keepdims=True)
    bce = jnp.maximum(x, 0.0) - x * y + jnp.log1p(jnp.exp(-jnp.abs(x)))
    if loss_type == "focal":
        if gamma == 0.0:
            mod = 1.0
        else:
            mod = jnp.exp(-gamma * y * x
                          - gamma * (jnp.maximum(-x, 0.0) + jnp.log1p(jnp.exp(-jnp.abs(x)))))
        return jnp.sum(alpha * bce * mod) / jnp.sum(y)
    elif loss_type == "sigmoid":
        return jnp.mean(alpha * bce)
    return jnp.float32(0.0)


if __name__ == "__main__":
    key = jax.random.PRNGKey(0)
    samples_per_cls = [30, 10, 40, 20]
    beta = 0.9999

    # 1) Tiny single-tile path (B*C < 128: minimal pad, ragged logits block).
    B, C = 8, 4
    k1, k2, key = jax.random.split(key, 3)
    logits = jax.random.normal(k1, (B, C), dtype=jnp.float32)
    labels = jax.random.randint(k2, (B,), 0, C, dtype=jnp.int32)
    for loss_type, gamma in (("focal", 2.0), ("focal", 0.0), ("sigmoid", 2.0)):
        module = WeightedLoss(loss_type, samples_per_cls, beta, gamma)
        out = module(logits, labels)
        jax.block_until_ready(out)
        ref = _reference_loss(logits, labels, module.weights, loss_type, gamma)
        np.testing.assert_allclose(np.asarray(out), np.asarray(ref),
                                   rtol=2e-4, atol=1e-5)

    # 2) Multi-tile reduction, bf16 logits kept narrow in HBM (f32 in-kernel).
    B2 = 5000
    k1, k2, key = jax.random.split(key, 3)
    logits2 = jax.random.normal(k1, (B2, C), dtype=jnp.float32).astype(jnp.bfloat16)
    labels2 = jax.random.randint(k2, (B2,), 0, C, dtype=jnp.int32)
    module2 = WeightedLoss("focal", samples_per_cls, beta, 2.0,
                           tile_rows=32, parallel=1)
    out2 = module2(logits2, labels2)
    jax.block_until_ready(out2)
    ref2 = _reference_loss(logits2.astype(jnp.float32), labels2,
                           module2.weights, "focal", 2.0)
    np.testing.assert_allclose(np.asarray(out2), np.asarray(ref2),
                               rtol=2e-4, atol=1e-5)

    # 3) Two parallel partials with an odd tile count: exercises the clamped
    #    index_map + in-kernel tile guard (works on 1-TC chips too).
    B3 = 2500
    k1, k2, key = jax.random.split(key, 3)
    logits3 = jax.random.normal(k1, (B3, C), dtype=jnp.float32)
    labels3 = jax.random.randint(k2, (B3,), 0, C, dtype=jnp.int32)
    module3 = WeightedLoss("sigmoid", samples_per_cls, beta, 0.0,
                           tile_rows=32, parallel=2)
    out3 = module3(logits3, labels3)
    jax.block_until_ready(out3)
    ref3 = _reference_loss(logits3, labels3, module3.weights, "sigmoid", 0.0)
    np.testing.assert_allclose(np.asarray(out3), np.asarray(ref3),
                               rtol=2e-4, atol=1e-5)

    print("KERNEL_OK")
</pallas_src>

<mosaic_0001>
module attributes {stable_mosaic.version = 11 : i64} {
  func.func @kernel(%arg0: i32, %arg1: i32, %arg2: memref<32x128xi8, #tpu.memory_space<vmem>>, %arg3: memref<32x128xf32, #tpu.memory_space<vmem>>, %arg4: memref<1x8x128xf32, #tpu.memory_space<vmem>>, %arg5: memref<8x128xf32, #tpu.memory_space<vmem>>) attributes {dimension_semantics = [#tpu.dimension_semantics<parallel>, #tpu.dimension_semantics<arbitrary>], iteration_bounds = array<i64: 1, 1>, scalar_prefetch = 0 : i64, scratch_operands = 1 : i64, tpu.core_type = #tpu.core_type<tc>, window_params = [{transform_indices = @transform_0, window_bounds = array<i64: 32, 128>}, {transform_indices = @transform_1, window_bounds = array<i64: 32, 128>}, {transform_indices = @transform_2, window_bounds = array<i64: 1, 8, 128>}]} {
    %c0_i32 = arith.constant 0 : i32
    %0 = arith.cmpi eq, %arg1, %c0_i32 : i32
    %1 = arith.extui %0 : i1 to i32
    %c0_i32_0 = arith.constant 0 : i32
    %2 = arith.cmpi ne, %1, %c0_i32_0 : i32
    scf.if %2 {
      %cst_24 = arith.constant 0.000000e+00 : f32
      %59 = vector.broadcast %cst_24 : f32 to vector<8x128xf32>
      %c0_25 = arith.constant 0 : index
      %c0_26 = arith.constant 0 : index
      %60 = vector.load %arg5[%c0_25, %c0_26] : memref<8x128xf32, #tpu.memory_space<vmem>>, vector<8x128xf32>
      tpu.vector_store %arg5[%c0_25, %c0_26], %59 {strides = array<i32>} : memref<8x128xf32, #tpu.memory_space<vmem>>, vector<8x128xf32>,
    } else {
    }
    %c0 = arith.constant 0 : index
    %c0_1 = arith.constant 0 : index
    %3 = vector.load %arg2[%c0, %c0_1] : memref<32x128xi8, #tpu.memory_space<vmem>>, vector<32x128xi8>
    %4 = arith.extsi %3 : vector<32x128xi8> to vector<32x128xi32>
    %c0_2 = arith.constant 0 : index
    %c0_3 = arith.constant 0 : index
    %5 = vector.load %arg3[%c0_2, %c0_3] : memref<32x128xf32, #tpu.memory_space<vmem>>, vector<32x128xf32>
    %c0_i32_4 = arith.constant 0 : i32
    %6 = vector.broadcast %c0_i32_4 : i32 to vector<32x128xi32>
    %7 = arith.cmpi sgt, %4, %6 : vector<32x128xi32>
    %c0_i32_5 = arith.constant 0 : i32
    %8 = vector.broadcast %c0_i32_5 : i32 to vector<32x128xi32>
    %9 = arith.cmpi ne, %4, %8 : vector<32x128xi32>
    %10 = math.absi %4 : vector<32x128xi32>
    %c1_i32 = arith.constant 1 : i32
    %11 = vector.broadcast %c1_i32 : i32 to vector<32x128xi32>
    %12 = arith.subi %10, %11 : vector<32x128xi32>
    %cst = arith.constant 0.000000e+00 : f32
    %13 = vector.broadcast %cst : f32 to vector<32x128xf32>
    %c0_i32_6 = arith.constant 0 : i32
    %14 = vector.broadcast %c0_i32_6 : i32 to vector<32x128xi32>
    %15 = arith.cmpi eq, %12, %14 : vector<32x128xi32>
    %cst_7 = arith.constant 0.640345513 : f32
    %16 = vector.broadcast %cst_7 : f32 to vector<32x128xf32>
    %17 = arith.select %15, %16, %13 : vector<32x128xi1>, vector<32x128xf32>
    %c1_i32_8 = arith.constant 1 : i32
    %18 = vector.broadcast %c1_i32_8 : i32 to vector<32x128xi32>
    %19 = arith.cmpi eq, %12, %18 : vector<32x128xi32>
    %cst_9 = arith.constant 1.91911697 : f32
    %20 = vector.broadcast %cst_9 : f32 to vector<32x128xf32>
    %21 = arith.select %19, %20, %17 : vector<32x128xi1>, vector<32x128xf32>
    %c2_i32 = arith.constant 2 : i32
    %22 = vector.broadcast %c2_i32 : i32 to vector<32x128xi32>
    %23 = arith.cmpi eq, %12, %22 : vector<32x128xi32>
    %cst_10 = arith.constant 0.480499208 : f32
    %24 = vector.broadcast %cst_10 : f32 to vector<32x128xf32>
    %25 = arith.select %23, %24, %21 : vector<32x128xi1>, vector<32x128xf32>
    %c3_i32 = arith.constant 3 : i32
    %26 = vector.broadcast %c3_i32 : i32 to vector<32x128xi32>
    %27 = arith.cmpi eq, %12, %26 : vector<32x128xi32>
    %cst_11 = arith.constant 0.960038304 : f32
    %28 = vector.broadcast %cst_11 : f32 to vector<32x128xf32>
    %29 = arith.select %27, %28, %25 : vector<32x128xi1>, vector<32x128xf32>
    %30 = math.absf %5 : vector<32x128xf32>
    %cst_12 = arith.constant 0.000000e+00 : f32
    %31 = vector.broadcast %cst_12 : f32 to vector<32x128xf32>
    %32 = arith.subf %31, %30 : vector<32x128xf32>
    %33 = math.exp %32 : vector<32x128xf32>
    %34 = math.log1p %33 : vector<32x128xf32>
    %cst_13 = arith.constant 0.000000e+00 : f32
    %35 = vector.broadcast %cst_13 : f32 to vector<32x128xf32>
    %36 = arith.maximumf %5, %35 : vector<32x128xf32>
    %cst_14 = arith.constant 0.000000e+00 : f32
    %37 = vector.broadcast %cst_14 : f32 to vector<32x128xf32>
    %38 = arith.select %7, %5, %37 : vector<32x128xi1>, vector<32x128xf32>
    %39 = arith.subf %36, %38 : vector<32x128xf32>
    %40 = arith.addf %39, %34 : vector<32x128xf32>
    %41 = arith.subf %36, %5 : vector<32x128xf32>
    %42 = arith.addf %38, %41 : vector<32x128xf32>
    %43 = arith.addf %42, %34 : vector<32x128xf32>
    %cst_15 = arith.constant -2.000000e+00 : f32
    %44 = vector.broadcast %cst_15 : f32 to vector<32x128xf32>
    %45 = arith.mulf %44, %43 : vector<32x128xf32>
    %46 = math.exp %45 : vector<32x128xf32>
    %47 = arith.mulf %29, %40 : vector<32x128xf32>
    %48 = arith.mulf %47, %46 : vector<32x128xf32>
    %cst_16 = arith.constant 0.000000e+00 : f32
    %49 = vector.broadcast %cst_16 : f32 to vector<32x128xf32>
    %50 = arith.select %9, %48, %49 : vector<32x128xi1>, vector<32x128xf32>
    %c0_17 = arith.constant 0 : index
    %c0_18 = arith.constant 0 : index
    %51 = vector.load %arg5[%c0_17, %c0_18] : memref<8x128xf32, #tpu.memory_space<vmem>>, vector<8x128xf32>
    %52 = vector.shape_cast %50 : vector<32x128xf32> to vector<4x8x128xf32>
    %cst_19 = arith.constant dense<0.000000e+00> : vector<8x128xf32>
    %53 = vector.multi_reduction <add>, %52, %cst_19 [0] : vector<4x8x128xf32> to vector<8x128xf32>
    %54 = arith.addf %51, %53 : vector<8x128xf32>
    %c0_20 = arith.constant 0 : index
    %c0_21 = arith.constant 0 : index
    %55 = vector.load %arg5[%c0_20, %c0_21] : memref<8x128xf32, #tpu.memory_space<vmem>>, vector<8x128xf32>
    tpu.vector_store %arg5[%c0_20, %c0_21], %54 {strides = array<i32>} : memref<8x128xf32, #tpu.memory_space<vmem>>, vector<8x128xf32>,
    %c0_i32_22 = arith.constant 0 : i32
    %56 = arith.cmpi eq, %arg1, %c0_i32_22 : i32
    %57 = arith.extui %56 : i1 to i32
    %c0_i32_23 = arith.constant 0 : i32
    %58 = arith.cmpi ne, %57, %c0_i32_23 : i32
    scf.if %58 {
      %c0_24 = arith.constant 0 : index
      %c0_25 = arith.constant 0 : index
      %59 = vector.load %arg5[%c0_24, %c0_25] : memref<8x128xf32, #tpu.memory_space<vmem>>, vector<8x128xf32>
      %60 = vector.shape_cast %59 : vector<8x128xf32> to vector<1x8x128xf32>
      %c0_26 = arith.constant 0 : index
      %c0_27 = arith.constant 0 : index
      %c0_28 = arith.constant 0 : index
      %61 = vector.load %arg4[%c0_26, %c0_27, %c0_28] : memref<1x8x128xf32, #tpu.memory_space<vmem>>, vector<1x8x128xf32>
      tpu.vector_store %arg4[%c0_26, %c0_27, %c0_28], %60 {strides = array<i32>} : memref<1x8x128xf32, #tpu.memory_space<vmem>>, vector<1x8x128xf32>,
    } else {
    }
    return
  }
  func.func @transform_0(%arg0: i32, %arg1: i32) -> (i32, i32) {
    %c1_i32 = arith.constant 1 : i32
    %0 = arith.muli %arg0, %c1_i32 : i32
    %1 = arith.addi %0, %arg1 : i32
    %c0_i32 = arith.constant 0 : i32
    %c0_i32_0 = arith.constant 0 : i32
    return %1, %c0_i32 : i32, i32
  }
  func.func @transform_1(%arg0: i32, %arg1: i32) -> (i32, i32) {
    %c1_i32 = arith.constant 1 : i32
    %0 = arith.muli %arg0, %c1_i32 : i32
    %1 = arith.addi %0, %arg1 : i32
    %c0_i32 = arith.constant 0 : i32
    %c0_i32_0 = arith.constant 0 : i32
    return %1, %c0_i32 : i32, i32
  }
  func.func @transform_2(%arg0: i32, %arg1: i32) -> (i32, i32, i32) {
    %c0_i32 = arith.constant 0 : i32
    %c0_i32_0 = arith.constant 0 : i32
    %c0_i32_1 = arith.constant 0 : i32
    return %arg0, %c0_i32, %c0_i32_0 : i32, i32, i32
  }
}

</mosaic_0001>

<bundles_post_ra>
// kernel: tpu_custom_call.1
= control target key start
LH: loop header
LB: loop body
LE: loop exit
PB: predicated region body
PF: predicated region fallthrough
CT: control target
= control target key end

     0   :  { %7 = vsyncpa [#allocation4], 0  ;;  %s511_s0 = inlined_call_operand.hbm [shape: s8[32,128], index: 0, kind: input, shape index: {}]   ;;  %s512_s1 = inlined_call_operand.vmem [shape: f32[1,128], index: 1, kind: input, shape index: {}]   ;;  %s513_s2 = inlined_call_operand.hbm [shape: f32[1,8,128], index: 2, kind: output, shape index: {}]  }
   0x1   :  { %8 = vsyncpa [#allocation5], 0  ;;  %s339_s9 = smov [#allocation3]  }
   0x2   :  { %s18_s10 = sshll.u32 %s339_s9, 4  ;;  %s19_s10 = int_to_ptr.vmem [resolvable:$true] %s18_s10 }
   0x3   :  { %s303_s11 = scalar_lea.vmem %s19_s10, 128  ;;  %p308_p1 = scmp.lt.s32.totalorder %s19_s10, %s19_s10 }
   0x4   :  { %p304_p0 = scmp.ne.s32.totalorder %s19_s10, %s303_s11  ;;  %p309_p2 = scmp.lt.s32.totalorder %s303_s11, %s303_s11 }
   0x6   :  { %p310_p3 = por %p309_p2, %p308_p1 }
   0x8   :  { %p311_p4 = pnand %p310_p3, %p304_p0 }
   0xa   :  { %314 = shalt.err (!%p311_p4)
}
   0xb   :  { %21 = dma.hbm_to_vmem [thread:$0]  %s511_s0, 128, %s19_s10, [#allocation4]  }
   0xc   :  { %335 = dma.done.wait [#allocation4], 128  }
   0xd   :  { %336 = vsyncadd [#allocation4], 4294967168  ;;  %v363_v0 = vld [vmem:[%s512_s1] sm:$0xff]  ;;  %v368_v1 = vld [vmem:[%s512_s1 + $0x8] sm:$0xff] }
   0xe   :  { %v127_v2 = vand.u32 2147483647, %v363_v0  ;;  %v128_v3 = vand.u32 2147483647, %v368_v1  ;;  %v375_v4 = vld [vmem:[%s512_s1 + $0x10] sm:$0xff]  ;;  %v380_v5 = vld [vmem:[%s512_s1 + $0x18] sm:$0xff] }
   0xf   :  { %v129_v6 = vand.u32 2147483647, %v375_v4  ;;  %v130_v9 = vand.u32 2147483647, %v380_v5  ;;  %v62_v17 = vld [vmem:[#allocation3] sm:$0xff]  ;;  %v179_v29 = vmax.f32 %v363_v0, 0.0 }
  0x10   :  { %v131_v7 = vsub.f32 0.0, %v127_v2  ;;  %v132_v8 = vsub.f32 0.0, %v128_v3  ;;  %v384_v21 = vunpack.c.0.s8 %v62_v17  ;;  %v386_v22 = vunpack.c.1.s8 %v62_v17  ;;  %s341_s1 = smov [#allocation6]  }
  0x11   :  { %v133_v12 = vsub.f32 0.0, %v129_v6  ;;  %v134_v13 = vsub.f32 0.0, %v130_v9  ;;  %v389_v24 = vunpack.c.2.s8 %v62_v17  ;;  %v393_v27 = vunpack.c.3.s8 %v62_v17  ;;  %s248_s21 = sshll.u32 %s341_s1, 4  ;;  %s249_s21 = int_to_ptr.vmem [resolvable:$true] %s248_s21 }
  0x12   :  { %v135_v10 = vmul.f32 1.442695, %v131_v7  ;;  %v137_v11 = vmul.f32 1.442695, %v132_v8  ;;  %v80_v23 = vsub.s32 0, %v384_v21  ;;  %v83_v28 = vsub.s32 0, %v386_v22  ;;  %p320_p6 = scmp.lt.s32.totalorder %s249_s21, %s249_s21 }
  0x13   :  { %v139_v14 = vmul.f32 1.442695, %v133_v12  ;;  %v141_v15 = vmul.f32 1.442695, %v134_v13  ;;  %vm71_vm0 = vcmp.gt.s32.totalorder %v384_v21, 0  ;;  %v86_v31 = vsub.s32 0, %v389_v24 }
  0x14   :  { %271 = vpow2.f32 %v135_v10  ;;  %v260_v34 = vmin.u32 %v80_v23, %v384_v21  ;;  %v89_v35 = vsub.s32 0, %v393_v27  ;;  %v180_v37 = vmax.f32 %v368_v1, 0.0  ;;  %s315_s22 = scalar_lea.vmem %s249_s21, 128 }
  0x15   :  { %273 = vpow2.f32 %v137_v11  ;;  %vm72_vm1 = vcmp.gt.s32.totalorder %v386_v22, 0  ;;  %vm73_vm2 = vcmp.gt.s32.totalorder %v389_v24, 0  ;;  %v261_v39 = vmin.u32 %v83_v28, %v386_v22  ;;  %p316_p5 = scmp.ne.s32.totalorder %s249_s21, %s315_s22  ;;  %p321_p7 = scmp.lt.s32.totalorder %s315_s22, %s315_s22 }
  0x16   :  { %275 = vpow2.f32 %v139_v14  ;;  %v195_v41 = vsub.f32 %v179_v29, %v363_v0  ;;  %vm74_vm3 = vcmp.gt.s32.totalorder %v393_v27, 0  ;;  %v262_v42 = vmin.u32 %v86_v31, %v389_v24 }
  0x17   :  { %277 = vpow2.f32 %v141_v15  ;;  %v417_v44 = vsel %vm71_vm0, %v363_v0, 0.0  ;;  %v263_v45 = vmin.u32 %v89_v35, %v393_v27  ;;  %v420_v46 = vadd.s32 4294967295, %v260_v34  ;;  %p322_p8 = por %p321_p7, %p320_p6 }
  0x18   :  { %v196_v48 = vsub.f32 %v180_v37, %v368_v1  ;;  %v181_v51 = vmax.f32 %v375_v4, 0.0  ;;  %v430_v52 = vsel %vm72_vm1, %v368_v1, 0.0  ;;  %v432_v54 = vadd.s32 4294967295, %v261_v39 }
  0x19   :  { %v199_v56 = vadd.f32 %v195_v41, %v417_v44  ;;  %v436_v57 = vadd.s32 4294967295, %v262_v42  ;;  %v182_v60 = vmax.f32 %v380_v5, 0.0  ;;  %v439_v62 = vadd.s32 4294967295, %v263_v45  ;;  %p323_p9 = pnand %p322_p8, %p316_p5 }
  0x1a   :  { %vm95_vm5 = vcmp.eq.s32.totalorder %v420_v46, 0  ;;  %v200_v63 = vadd.f32 %v196_v48, %v430_v52  ;;  %v197_v7 = vsub.f32 %v181_v51, %v375_v4  ;;  %v450_v10 = vsel %vm73_vm2, %v375_v4, 0.0 }
  0x1b   :  { %vm96_vm7 = vcmp.eq.s32.totalorder %v432_v54, 0  ;;  %v198_v14 = vsub.f32 %v182_v60, %v380_v5  ;;  %vm97_vm8 = vcmp.eq.s32.totalorder %v436_v57, 0  ;;  %v186_v15 = vsel %vm74_vm3, %v380_v5, 0.0 }
  0x1c   :  { %vm103_vm9 = vcmp.eq.s32.totalorder %v420_v46, 1  ;;  %v201_v23 = vadd.f32 %v197_v7, %v450_v10  ;;  %vm104_vm12 = vcmp.eq.s32.totalorder %v432_v54, 1  ;;  %vm98_vm13 = vcmp.eq.s32.totalorder %v439_v62, 0 }
  0x1d   :  { %vm111_vm14 = vcmp.eq.s32.totalorder %v420_v46, 2  ;;  %v187_v42 = vsub.f32 %v179_v29, %v417_v44  ;;  %vm112_vm15 = vcmp.eq.s32.totalorder %v432_v54, 2  ;;  %vm119_vm0 = vcmp.eq.s32.totalorder %v420_v46, 3 }
  0x1e   :  { %vm105_vm1 = vcmp.eq.s32.totalorder %v436_v57, 1  ;;  %vm120_vm2 = vcmp.eq.s32.totalorder %v432_v54, 3  ;;  %vm106_vm3 = vcmp.eq.s32.totalorder %v439_v62, 1  ;;  %v189_v54 = vsub.f32 %v181_v51, %v450_v10 }
  0x21   :  { %v272_v16 = vpop.eup %271 }
  0x22   :  { %v143_v18 = vadd.f32 1.0, %v272_v16  ;;  %v274_v19 = vpop.eup %273  ;;  %v146_v25 = vmul.f32 -0.5, %v272_v16  ;;  %v149_v40 = vand.u32 2147483647, %v272_v16 }
  0x23   :  { %v152_v20 = vadd.f32 1.0, %v274_v19  ;;  %v391_v26 = vpop.eup %275  ;;  %v155_v32 = vmul.f32 -0.5, %v274_v19  ;;  %v158_v47 = vand.u32 2147483647, %v274_v19 }
  0x24   :  { %279 = vlog2.f32 %v143_v18  ;;  %v397_v30 = vpop.eup %277  ;;  %v161_v33 = vadd.f32 1.0, %v391_v26  ;;  %v147_v38 = vadd.f32 1.0, %v146_v25  ;;  %v164_v50 = vmul.f32 -0.5, %v391_v26 }
  0x25   :  { %281 = vlog2.f32 %v152_v20  ;;  %v170_v36 = vadd.f32 1.0, %v397_v30  ;;  %v156_v43 = vadd.f32 1.0, %v155_v32  ;;  %vm150_vm4 = vcmp.lt.f32.partialorder %v149_v40, 0.0004427343 }
  0x26   :  { %283 = vlog2.f32 %v161_v33  ;;  %v148_v49 = vmul.f32 %v272_v16, %v147_v38  ;;  %v173_v55 = vmul.f32 -0.5, %v397_v30  ;;  %vm159_vm6 = vcmp.lt.f32.partialorder %v158_v47, 0.0004427343 }
  0x27   :  { %285 = vlog2.f32 %v170_v36  ;;  %v157_v59 = vmul.f32 %v274_v19, %v156_v43  ;;  %v165_v6 = vadd.f32 1.0, %v164_v50  ;;  %v167_v8 = vand.u32 2147483647, %v391_v26 }
  0x28   :  { %v174_v9 = vadd.f32 1.0, %v173_v55  ;;  %v176_v13 = vand.u32 2147483647, %v397_v30  ;;  %v340_v18 = vmov 0.0   ;;  %v202_v38 = vadd.f32 %v198_v14, %v186_v15 }
  0x29   :  { %v99_v19 = vsel %vm95_vm5, 0.6403455, %v340_v18  ;;  %v166_v20 = vmul.f32 %v391_v26, %v165_v6  ;;  %vm466_vm10 = vcmp.lt.f32.partialorder %v167_v8, 0.0004427343  ;;  %v100_v35 = vsel %vm96_vm7, 0.6403455, %v340_v18 }
  0x2a   :  { %v175_v31 = vmul.f32 %v397_v30, %v174_v9  ;;  %vm177_vm11 = vcmp.lt.f32.partialorder %v176_v13, 0.0004427343  ;;  %v107_v40 = vsel %vm103_vm9, 1.919117, %v99_v19  ;;  %v108_v45 = vsel %vm104_vm12, 1.919117, %v100_v35 }
  0x2b   :  { %v115_v48 = vsel %vm111_vm14, 0.4804992, %v107_v40  ;;  %v102_v0 = vsel %vm98_vm13, 0.6403455, %v340_v18  ;;  %v116_v44 = vsel %vm112_vm15, 0.4804992, %v108_v45 }
  0x2c   :  { %v123_v46 = vsel %vm119_vm0, 0.9600383, %v115_v48  ;;  %vm114_vm5 = vcmp.eq.s32.totalorder %v439_v62, 2  ;;  %vm122_vm7 = vcmp.eq.s32.totalorder %v439_v62, 3  ;;  %vm76_vm9 = vcmp.ne.s32.totalorder %v386_v22, 0 }
  0x31   :  { %v280_v53 = vpop.eup %279 }
  0x32   :  { %v145_v58 = vmul.f32 0.6931472, %v280_v53  ;;  %v282_v61 = vpop.eup %281  ;;  %v101_v53 = vsel %vm97_vm8, 0.6403455, %v340_v18  ;;  %vm75_vm8 = vcmp.ne.s32.totalorder %v384_v21, 0 }
  0x33   :  { %v154_v3 = vmul.f32 0.6931472, %v282_v61  ;;  %v284_v25 = vpop.eup %283 }
  0x34   :  { %v151_v2 = vsel %vm150_vm4, %v148_v49, %v145_v58  ;;  %v286_v34 = vpop.eup %285  ;;  %v163_v36 = vmul.f32 0.6931472, %v284_v25  ;;  %v188_v49 = vsub.f32 %v180_v37, %v430_v52  ;;  %v109_v52 = vsel %vm105_vm1, 1.919117, %v101_v53 }
  0x35   :  { %v203_v11 = vadd.f32 %v199_v56, %v151_v2  ;;  %v160_v12 = vsel %vm159_vm6, %v157_v59, %v154_v3  ;;  %v172_v26 = vmul.f32 0.6931472, %v286_v34  ;;  %v191_v55 = vadd.f32 %v187_v42, %v151_v2 }
  0x36   :  { %v204_v16 = vadd.f32 %v200_v63, %v160_v12  ;;  %v169_v30 = vsel %vm466_vm10, %v166_v20, %v163_v36  ;;  %v192_v37 = vadd.f32 %v188_v49, %v160_v12  ;;  %vm113_vm4 = vcmp.eq.s32.totalorder %v436_v57, 2 }
  0x37   :  { %v207_v17 = vmul.f32 -2.0, %v203_v11  ;;  %v178_v41 = vsel %vm177_vm11, %v175_v31, %v172_v26  ;;  %v205_v43 = vadd.f32 %v201_v23, %v169_v30  ;;  %v124_v58 = vsel %vm120_vm2, 0.9600383, %v116_v44 }
  0x38   :  { %v208_v32 = vmul.f32 -2.0, %v204_v16  ;;  %v206_v47 = vadd.f32 %v202_v38, %v178_v41  ;;  %v110_v59 = vsel %vm106_vm3, 1.919117, %v102_v0  ;;  %v219_v61 = vmul.f32 %v191_v55, %v123_v46 }
  0x39   :  { %v211_v33 = vmul.f32 1.442695, %v207_v17  ;;  %v209_v50 = vmul.f32 -2.0, %v205_v43  ;;  %v190_v63 = vsub.f32 %v182_v60, %v186_v15  ;;  %v117_v2 = vsel %vm113_vm4, 0.4804992, %v109_v52 }
  0x3a   :  { %v213_v39 = vmul.f32 1.442695, %v208_v32  ;;  %v210_v29 = vmul.f32 -2.0, %v206_v47  ;;  %vm121_vm6 = vcmp.eq.s32.totalorder %v436_v57, 3  ;;  %v220_v3 = vmul.f32 %v192_v37, %v124_v58 }
  0x3b   :  { %287 = vpow2.f32 %v211_v33  ;;  %v215_v56 = vmul.f32 1.442695, %v209_v50  ;;  %v118_v7 = vsel %vm114_vm5, 0.4804992, %v110_v59  ;;  %v193_v8 = vadd.f32 %v189_v54, %v169_v30 }
  0x3c   :  { %289 = vpow2.f32 %v213_v39  ;;  %v217_v1 = vmul.f32 1.442695, %v210_v29  ;;  %v125_v4 = vsel %vm121_vm6, 0.9600383, %v117_v2  ;;  %v194_v51 = vadd.f32 %v190_v63, %v178_v41 }
  0x3d   :  { %291 = vpow2.f32 %v215_v56  ;;  %v126_v10 = vsel %vm122_vm7, 0.9600383, %v118_v7  ;;  %v221_v60 = vmul.f32 %v193_v8, %v125_v4  ;;  %vm77_vm10 = vcmp.ne.s32.totalorder %v389_v24, 0 }
  0x3e   :  { %293 = vpow2.f32 %v217_v1  ;;  %v222_v57 = vmul.f32 %v194_v51, %v126_v10  ;;  %vm78_vm11 = vcmp.ne.s32.totalorder %v393_v27, 0 }
  0x48   :  { %v288_v6 = vpop.eup %287 }
  0x49   :  { %v223_v9 = vmul.f32 %v288_v6, %v219_v61  ;;  %v290_v11 = vpop.eup %289 }
  0x4a   :  { %v224_v5 = vmul.f32 %v290_v11, %v220_v3  ;;  %v292_v14 = vpop.eup %291 }
  0x4b   :  { %v227_v12 = vsel %vm75_vm8, %v223_v9, 0.0  ;;  %v294_v62 = vpop.eup %293  ;;  %v225_v16 = vmul.f32 %v292_v14, %v221_v60 }
  0x4c   :  { %v228_v13 = vsel %vm76_vm9, %v224_v5, 0.0  ;;  %v226_v17 = vmul.f32 %v294_v62, %v222_v57 }
  0x4d   :  { %v232_v15 = vadd.f32 %v228_v13, %v227_v12  ;;  %v229_v21 = vsel %vm77_vm10, %v225_v16, 0.0 }
  0x4e   :  { %v230_v22 = vsel %vm78_vm11, %v226_v17, 0.0 }
  0x4f   :  { %v233_v18 = vadd.f32 %v232_v15, %v229_v21 }
  0x51   :  { %v234_v19 = vadd.f32 %v233_v18, %v230_v22 }
  0x53   :  { %241 = vst [vmem:[#allocation6] sm:$0xff] %v234_v19 }
  0x54   :  { %326 = shalt.err (!%p323_p9)
}
  0x55   :  { %251 = dma.vmem_to_hbm [thread:$0]  %s249_s21, 128, %s513_s2, [#allocation5]  }
  0x56   :  { %337 = dma.done.wait [#allocation5], 128  }
  0x57   :  { %338 = vsyncadd [#allocation5], 4294967168 }
  0x58   :  { %255 = vsyncpa [#allocation4], 1 }
  0x59   :  { %256 = vsyncpa [#allocation5], 1 }

</bundles_post_ra>
